<compile_context>
chip_gen: v7x
topology: tpu7x:2x2x1
jax: 0.10.0
libtpu: 0.0.40
codegen_flags: <defaults>
</compile_context>

<pallas_src>
import jax
import jax.numpy as jnp
from jax.experimental import pallas as pl
from jax.experimental.pallas import tpu as pltpu


def _vdrop_kernel(x_ref, m_ref, o_ref):
    # Mask block has a size-1 "time" axis (or a single row in the flattened
    # layout); jnp broadcasting handles every block layout used below.
    o_ref[...] = x_ref[...] * m_ref[...]


def _cdiv(a, b):
    return -(-a // b)


def _round_up(a, m):
    return _cdiv(a, m) * m


def _sublane(dtype):
    # Minimum second-to-last tile dim: 8 (f32), 16 (bf16), 32 (int8/fp8).
    return max(8, 32 // jnp.dtype(dtype).itemsize)


def _vmem_capacity_bytes():
    try:
        return int(pltpu.get_tpu_info().vmem_capacity_bytes)
    except Exception:
        # Conservative fallback: v7x per-TC VMEM (smallest across generations).
        return 64 * 1024 * 1024


def _draw_mask(seed, p, shape, dtype):
    """Locked-dropout mask: Bernoulli(1-p) / (1-p), cast to x's dtype."""
    keep_prob = 1.0 - p
    keep = jax.random.bernoulli(jax.random.PRNGKey(seed), keep_prob, shape)
    return (keep.astype(jnp.float32) * (1.0 / keep_prob)).astype(dtype)


def _compiler_params(sem, tile_bytes, mask_bytes, vmem_cap):
    # Double-buffered input + output tiles + (double-buffered) mask + headroom.
    footprint = 4 * tile_bytes + 2 * mask_bytes + (4 << 20)
    vmem_limit = int(min(vmem_cap * 3 // 4, max(32 << 20, footprint)))
    return pltpu.CompilerParams(dimension_semantics=sem,
                                vmem_limit_bytes=vmem_limit)


def variational_dropout(x, seed, *, p=0.5, batch_first=False, training=True,
                        block_bytes=None):
    """JAX/Pallas equivalent of VariationalDropout.forward.

    x:    (seq, batch, hidden) if batch_first=False, else (batch, seq, hidden)
    seed: python int, deterministic mask seed
    block_bytes: target bytes per input tile; default is derived from the
                 TPU generation's VMEM capacity (~4-8 MiB).
    """
    if not training or not p:
        return x
    if p >= 1.0:
        # PyTorch would silently produce a 0 * inf = NaN mask here.
        raise ValueError("VariationalDropout: p must be < 1.0")

    vmem_cap = _vmem_capacity_bytes()
    if block_bytes is None:
        block_bytes = min(8 << 20, vmem_cap // 12)

    itemsize = x.dtype.itemsize
    sl = _sublane(x.dtype)

    def _cost(mask_size):
        return pl.CostEstimate(
            flops=x.size, transcendentals=0,
            bytes_accessed=2 * x.size * itemsize + mask_size * itemsize)

    if not batch_first:
        # ------------------------------------------------------------------
        # (T, B, H): flatten to lane-dense 2-D (T, B*H) * (1, B*H).
        # ------------------------------------------------------------------
        t, b, h = x.shape
        mask = _draw_mask(seed, p, (1, b, h), x.dtype)
        bh = b * h
        x2 = x.reshape(t, bh)          # row-major preserving, free
        m2 = mask.reshape(1, bh)

        row_bytes = bh * itemsize
        tt = max(1, block_bytes // max(row_bytes, 1))
        if tt >= t:
            tt = t
        else:
            tt = min(t, max(sl, (tt // sl) * sl))
        # Keep >= 2 grid steps when possible so v7x's second TC has work.
        if tt == t and t >= 2 * sl:
            tt = min(t, _round_up(_cdiv(t, 2), sl))

        grid = (_cdiv(t, tt),)
        out = pl.pallas_call(
            _vdrop_kernel,
            out_shape=jax.ShapeDtypeStruct((t, bh), x.dtype),
            grid=grid,
            in_specs=[pl.BlockSpec((tt, bh), lambda i: (i, 0)),
                      pl.BlockSpec((1, bh), lambda i: (0, 0))],
            out_specs=pl.BlockSpec((tt, bh), lambda i: (i, 0)),
            compiler_params=_compiler_params(
                ("parallel",), tt * row_bytes, bh * itemsize, vmem_cap),
            cost_estimate=_cost(bh),
        )(x2, m2)
        return out.reshape(t, b, h)

    # ----------------------------------------------------------------------
    # batch_first=True: (B, T, H), mask (B, 1, H)
    # ----------------------------------------------------------------------
    b, t, h = x.shape
    mask = _draw_mask(seed, p, (b, 1, h), x.dtype)
    slab_bytes = t * h * itemsize
    mask_bytes = b * h * itemsize

    if slab_bytes <= block_bytes:
        # Contiguous (tB, T, H) slabs over the batch axis (fully contiguous DMA).
        tb = max(1, min(b, block_bytes // max(slab_bytes, 1)))
        if tb == b and b >= 2:
            tb = _cdiv(b, 2)            # keep both v7x TCs busy
        grid = (_cdiv(b, tb),)
        return pl.pallas_call(
            _vdrop_kernel,
            out_shape=jax.ShapeDtypeStruct(x.shape, x.dtype),
            grid=grid,
            in_specs=[pl.BlockSpec((tb, t, h), lambda i: (i, 0, 0)),
                      pl.BlockSpec((tb, 1, h), lambda i: (i, 0, 0))],
            out_specs=pl.BlockSpec((tb, t, h), lambda i: (i, 0, 0)),
            compiler_params=_compiler_params(
                ("parallel",), tb * slab_bytes, mask_bytes, vmem_cap),
            cost_estimate=_cost(b * h),
        )(x, mask)

    # Large T*H: 2-D grid (batch, time-tile).  Batch dim is squeezed, so each
    # block is one contiguous (tT, H) slab within a single batch row (no
    # strided sub-copies), and the mask block is indexed only by the batch axis.
    row_bytes = h * itemsize
    tt = max(1, block_bytes // max(row_bytes, 1))
    if tt >= t:
        tt = t
    else:
        tt = min(t, max(sl, (tt // sl) * sl))
    grid = (b, _cdiv(t, tt))
    return pl.pallas_call(
        _vdrop_kernel,
        out_shape=jax.ShapeDtypeStruct(x.shape, x.dtype),
        grid=grid,
        in_specs=[pl.BlockSpec((None, tt, h), lambda bi, ti: (bi, ti, 0)),
                  pl.BlockSpec((None, 1, h), lambda bi, ti: (bi, 0, 0))],
        out_specs=pl.BlockSpec((None, tt, h), lambda bi, ti: (bi, ti, 0)),
        compiler_params=_compiler_params(
            ("parallel", "parallel"), tt * row_bytes, mask_bytes, vmem_cap),
        cost_estimate=_cost(b * h),
    )(x, mask)


if __name__ == "__main__":
    p = 0.5
    key = jax.random.PRNGKey(0)
    k1, k2, k3, k4 = jax.random.split(key, 4)

    # ---- batch_first=False (f32): (seq, batch, hidden), forced multi-step grid
    seq, batch, hidden = 16, 8, 128
    x = jax.random.normal(k1, (seq, batch, hidden), dtype=jnp.float32)
    y = variational_dropout(x, seed=0, p=p, batch_first=False, training=True,
                            block_bytes=8 * batch * hidden * 4)  # tT=8, grid=2
    y = jax.block_until_ready(y)
    assert y.shape == x.shape and y.dtype == x.dtype
    ref_mask = _draw_mask(0, p, (1, batch, hidden), x.dtype)
    assert bool(jnp.allclose(y, ref_mask * x, atol=1e-6))
    # Locked-dropout semantics: mask only takes values {0, 1/(1-p)} and is
    # broadcast (identical) along the time axis by construction.
    assert bool(jnp.all((jnp.abs(ref_mask) < 1e-6)
                        | (jnp.abs(ref_mask - 1.0 / (1.0 - p)) < 1e-6)))

    # Default (auto) tiling path, incl. the >=2-step split, gives same result.
    y_auto = jax.block_until_ready(
        variational_dropout(x, seed=0, p=p, batch_first=False, training=True))
    assert bool(jnp.array_equal(y_auto, y))

    # ---- batch_first=False (bf16): dtype-aware sublane (tT=16) + partial tile
    seq_b = 24
    xb16 = jax.random.normal(k2, (seq_b, batch, hidden)).astype(jnp.bfloat16)
    yb16 = variational_dropout(xb16, seed=3, p=p, batch_first=False,
                               training=True,
                               block_bytes=batch * hidden * 2)  # -> tT=16, grid=2
    yb16 = jax.block_until_ready(yb16)
    assert yb16.shape == xb16.shape and yb16.dtype == jnp.bfloat16
    ref16 = _draw_mask(3, p, (1, batch, hidden), xb16.dtype) * xb16
    assert bool(jnp.allclose(yb16.astype(jnp.float32), ref16.astype(jnp.float32),
                             atol=1e-2, rtol=1e-2))

    # ---- batch_first=True, contiguous batch-slab path (T*H fits the budget)
    bsz, seq2 = 4, 8
    xt = jax.random.normal(k3, (bsz, seq2, hidden), dtype=jnp.float32)
    yt = jax.block_until_ready(
        variational_dropout(xt, seed=7, p=p, batch_first=True, training=True))
    assert yt.shape == xt.shape and yt.dtype == xt.dtype
    ref_t = _draw_mask(7, p, (bsz, 1, hidden), xt.dtype)
    assert bool(jnp.allclose(yt, ref_t * xt, atol=1e-6))

    # ---- batch_first=True, 2-D (batch, time-tile) path (forced small budget)
    seq3 = 16
    xt2 = jax.random.normal(k4, (bsz, seq3, hidden), dtype=jnp.float32)
    yt2 = jax.block_until_ready(
        variational_dropout(xt2, seed=11, p=p, batch_first=True, training=True,
                            block_bytes=8 * hidden * 4))  # tT=8, grid=(4,2)
    ref_t2 = _draw_mask(11, p, (bsz, 1, hidden), xt2.dtype)
    assert bool(jnp.allclose(yt2, ref_t2 * xt2, atol=1e-6))

    # ---- eval / p=0 passthrough
    assert bool(jnp.array_equal(
        variational_dropout(x, seed=0, p=p, training=False), x))
    assert bool(jnp.array_equal(
        variational_dropout(x, seed=0, p=0.0, training=True), x))

    print("KERNEL_OK")
</pallas_src>

<mosaic_0001>
module attributes {stable_mosaic.version = 11 : i64} {
  func.func @_vdrop_kernel(%arg0: i32, %arg1: memref<8x1024xf32, #tpu.memory_space<vmem>>, %arg2: memref<1x1024xf32, #tpu.memory_space<vmem>>, %arg3: memref<8x1024xf32, #tpu.memory_space<vmem>>) attributes {dimension_semantics = [#tpu.dimension_semantics<parallel>], iteration_bounds = array<i64: 2>, scalar_prefetch = 0 : i64, scratch_operands = 0 : i64, tpu.core_type = #tpu.core_type<tc>, window_params = [{transform_indices = @transform_0, window_bounds = array<i64: 8, 1024>}, {pipeline_mode = #tpu.pipeline_mode<synchronous>, transform_indices = @transform_1, window_bounds = array<i64: 1, 1024>}, {transform_indices = @transform_2, window_bounds = array<i64: 8, 1024>}]} {
    %c0 = arith.constant 0 : index
    %c0_0 = arith.constant 0 : index
    %0 = vector.load %arg1[%c0, %c0_0] : memref<8x1024xf32, #tpu.memory_space<vmem>>, vector<8x1024xf32>
    %c0_1 = arith.constant 0 : index
    %c0_2 = arith.constant 0 : index
    %1 = vector.load %arg2[%c0_1, %c0_2] : memref<1x1024xf32, #tpu.memory_space<vmem>>, vector<1x1024xf32>
    %2 = vector.broadcast %1 : vector<1x1024xf32> to vector<8x1024xf32>
    %3 = arith.mulf %0, %2 : vector<8x1024xf32>
    %c0_3 = arith.constant 0 : index
    %c0_4 = arith.constant 0 : index
    %4 = vector.load %arg3[%c0_3, %c0_4] : memref<8x1024xf32, #tpu.memory_space<vmem>>, vector<8x1024xf32>
    tpu.vector_store %arg3[%c0_3, %c0_4], %3 {strides = array<i32>} : memref<8x1024xf32, #tpu.memory_space<vmem>>, vector<8x1024xf32>,
    return
  }
  func.func @transform_0(%arg0: i32) -> (i32, i32) {
    %c0_i32 = arith.constant 0 : i32
    %c0_i32_0 = arith.constant 0 : i32
    return %arg0, %c0_i32 : i32, i32
  }
  func.func @transform_1(%arg0: i32) -> (i32, i32) {
    %c0_i32 = arith.constant 0 : i32
    %c0_i32_0 = arith.constant 0 : i32
    %c0_i32_1 = arith.constant 0 : i32
    return %c0_i32, %c0_i32_0 : i32, i32
  }
  func.func @transform_2(%arg0: i32) -> (i32, i32) {
    %c0_i32 = arith.constant 0 : i32
    %c0_i32_0 = arith.constant 0 : i32
    return %arg0, %c0_i32 : i32, i32
  }
}

</mosaic_0001>

<bundles_post_ra>
// kernel: tpu_custom_call.1
= control target key start
LH: loop header
LB: loop body
LE: loop exit
PB: predicated region body
PF: predicated region fallthrough
CT: control target
= control target key end

     0   :  { %7 = vsyncpa [#allocation3], 0  ;;  %s768_s0 = inlined_call_operand.hbm [shape: f32[16,1024], index: 0, kind: input, shape index: {}]   ;;  %s769_s1 = inlined_call_operand.hbm [shape: f32[1,1024], index: 1, kind: input, shape index: {}]   ;;  %s770_s2 = inlined_call_operand.hbm [shape: f32[16,1024], index: 2, kind: output, shape index: {}]  }
   0x1   :  { %9 = vsyncpa [#allocation3 + $0x1], 0 }
   0x2   :  { %10 = vsyncpa [#allocation6], 0 }
   0x3   :  { %11 = vsyncpa [#allocation4], 0 }
   0x4   :  { %13 = vsyncpa [#allocation4 + $0x1], 0  ;;  %s557_s9 = smov 0   ;;  %s559_s10 = smov 0  }
   0x5   :  { %s561_s11 = smov 0   ;;  %s563_s12 = smov 0  }
   0x6 LB: > { %s578_s13 = sadd.s32 4294967295, %s537_s12   ;;  %s334_s14 = sadd.s32 4294967294, %s537_s12   ;;  %s537_s12 = sphi %s563_s12, %s794_s12   ;;  %s533_s11 = sphi %s561_s11, %s793_s11   ;;  %s529_s10 = sphi %s559_s10, %s792_s10   ;;  %s525_s9 = sphi %s557_s9, %s791_s9  }
   0x7   : > { %p39_p0 = scmp.ne.s32.totalorder %s529_s10, %s525_s9  ;;  %p771_p1 = scmp.eq.s32.totalorder %s578_s13, 0 }
   0x8   : > { %p90_p3 = scmp.eq.s32.totalorder %s334_s14, 1  ;;  %p335_p5 = scmp.ge.s32.totalorder %s537_s12, 1 }
   0x9   : > { %p587_p4 = por %p771_p1, %p39_p0  ;;  %p97_p7 = scmp.lt.s32.totalorder %s537_s12, 3 }
   0xa   : > { %p592_p6 = por %p90_p3, %p39_p0  ;;  %s539_s18 = smov [#allocation5]  }
   0xb   : > { %s774_s15 = scalar_select %p587_p4, 1, 0 }
   0xc   : > { %s775_s16 = scalar_select %p592_p6, 1, 0 }
   0xd   : > { %p597_p8 = pnand %p335_p5, %p97_p7  ;;  %s110_s19 = sshll.u32 %s539_s18, 4  ;;  %s111_s19 = int_to_ptr.vmem [resolvable:$true] %s110_s19 }
   0xe   : > { %s605_s20 = sadd.s32 1, %s537_s12   ;;  %s26_s24 = sadd.s32 1, %s533_s11 }
   0xf   : > { %s776_s17 = scalar_select %p597_p8, 1, 0 }
  0x10   : > { %p360_p10 = pneg %p597_p8  ;;  %s23_s22 = ssub.s32 %s537_s12, %s605_s20 }
  0x11   : > { %p615_p12 = scmp.eq.s32.totalorder %s23_s22, 0  ;;  %s409_s27 = scalar_lea.hbm %s769_s1, 128 }
  0x12   : > { %p609_p11 = pnand %p360_p10, %p771_p1  ;;  %p410_p0 = scmp.ne.s32.totalorder %s769_s1, %s409_s27 }
  0x13   : > { %s778_s23 = scalar_select %p615_p12, 1, 0 }
  0x14   : > { %p411_p3 = pneg %p609_p11  ;;  %p416_p10 = scmp.lt.u32.totalorder %s409_s27, %s769_s1 }
  0x16   : > { %p412_p5 = pnand %p411_p3, %p410_p0 }
  0x18   : > { %p413_p7 = pneg %p412_p5 }
  0x1a   : > { %p418_p9 = pnand %p416_p10, %p413_p7 }
  0x1c   : > { %421 = shalt.err (!%p418_p9)
}
  0x1d   : > { %s422_s4 = scalar_lea.vmem %s111_s19, 128  ;;  %p430_p6 = scmp.lt.s32.totalorder %s111_s19, %s111_s19 }
  0x1e   : > { %p423_p1 = scmp.ne.s32.totalorder %s111_s19, %s422_s4  ;;  %p431_p4 = scmp.lt.s32.totalorder %s422_s4, %s422_s4 }
  0x20   : > { %p425_p2 = pnand %p423_p1, %p411_p3  ;;  %p432_p8 = por %p431_p4, %p430_p6 }
  0x22   : > { %p426_p13 = pneg %p425_p2 }
  0x24   : > { %p433_p12 = pnand %p432_p8, %p426_p13 }
  0x26   : > { %436 = shalt.err (!%p433_p12)
}
  0x27   : > { %363 = dma.hbm_to_vmem [thread:$0]  (!%p609_p11), %s769_s1, 128, %s111_s19, [#allocation6]  }
  0x28   : > { %p779_p1 = scmp.ne.s32.totalorder %s778_s23, 0  ;;  %p34_p2 = scmp.eq.s32.totalorder %s537_s12, 0 }
  0x29   : > { %p780_p4 = scmp.ne.s32.totalorder %s533_s11, %s529_s10  ;;  %p781_p6 = scmp.eq.s32.totalorder %s578_s13, 1 }
  0x2a   : > { %s641_s7 = scalar_select %p779_p1, %s533_s11, %s26_s24  }
  0x2b   : > { %p649_p8 = por %p781_p6, %p780_p4  ;;  %p373_p9 = scmp.lt.s32.totalorder %s537_s12, 2 }
  0x2c   : > { %s121_s14 = sand.u32 1, %s533_s11   ;;  %p783_p12 = pmov %p780_p4 }
  0x2d   : > { %s338_s18 = sshll.u32 %s121_s14, 6  ;;  %s350_s21 = sshll.u32 %s537_s12, 10 }
  0x2e   : > { %p35_p13 = por %p34_p2, %p783_p12  ;;  %s662_s19 = scalar_lea.hbm %s768_s0, %s350_s21 }
  0x2f   : > { %s125_s23 = scalar_lea.vmem [#allocation2], %s338_s18  ;;  %s122_s27 = scalar_lea.sflag [#allocation3], %s121_s14 }
  0x30   : > { %s133_s24 = sshll.u32 %s125_s23, 4  ;;  %p664_p11 = pnand %p373_p9, %p35_p13  ;;  %s668_s24 = int_to_ptr.vmem [resolvable:$true] %s133_s24 }
  0x31   : > { %s437_s28 = scalar_lea.hbm %s662_s19, 1024  ;;  %s442_s3 = scalar_lea.hbm %s768_s0, 2048 }
  0x32   : > { %p438_p0 = scmp.ne.s32.totalorder %s662_s19, %s437_s28  ;;  %p439_p3 = pneg %p664_p11 }
  0x33   : > { %p443_p10 = scmp.lt.u32.totalorder %s662_s19, %s768_s0  ;;  %p444_p1 = scmp.lt.u32.totalorder %s442_s3, %s437_s28 }
  0x34   : > { %p440_p5 = pnand %p439_p3, %p438_p0  ;;  %p446_p4 = scmp.lt.u32.totalorder %s437_s28, %s662_s19 }
  0x35   : > { %p445_p2 = por %p444_p1, %p443_p10 }
  0x36   : > { %p441_p7 = pneg %p440_p5 }
  0x37   : > { %p447_p6 = por %p446_p4, %p445_p2 }
  0x39   : > { %p448_p9 = pnand %p447_p6, %p441_p7 }
  0x3b   : > { %451 = shalt.err (!%p448_p9)
}
  0x3c   : > { %s452_s6 = scalar_lea.vmem %s668_s24, 1024  ;;  %s540_s14 = smov [#allocation2]  }
  0x3d   : > { %p453_p12 = scmp.ne.s32.totalorder %s668_s24, %s452_s6  ;;  %s457_s18 = sshll.u32 %s540_s14, 4  ;;  %s458_s18 = int_to_ptr.vmem [resolvable:$false] %s457_s18 }
  0x3e   : > { %s459_s21 = scalar_lea.vmem %s458_s18, 2048  ;;  %p460_p5 = scmp.lt.s32.totalorder %s668_s24, %s458_s18 }
  0x3f   : > { %p455_p13 = pnand %p453_p12, %p439_p3  ;;  %p461_p10 = scmp.lt.s32.totalorder %s459_s21, %s452_s6 }
  0x41   : > { %p456_p0 = pneg %p455_p13  ;;  %p462_p1 = por %p461_p10, %p460_p5 }
  0x43   : > { %p463_p2 = pnand %p462_p1, %p456_p0 }
  0x45   : > { %466 = shalt.err (!%p463_p2)
}
  0x46   : > { %367 = dma.hbm_to_vmem [thread:$0]  (!%p664_p11), %s662_s19, 1024, %s668_s24, %s122_s27  }
  0x47   : > { %p785_p7 = scmp.ne.s32.totalorder %s776_s17, 0 }
  0x48   : > { %s698_s22 = sand.u32 (!%p785_p7), 1, %s529_s10   ;;  %p786_p3 = scmp.ne.s32.totalorder (!%p785_p7), %s774_s15, 0 }
  0x49   : > { %142 = sbr.rel (%p785_p7) target bundleno = 111 (0x6f), region = 28  ;;  %s342_s25 = sshll.u32 (!%p785_p7), %s698_s22, 6 }
  0x4a   : > { %s145_s23 = scalar_lea.sflag (!%p785_p7), [#allocation3], %s698_s22  ;;  %s702_s28 = scalar_lea.vmem (!%p785_p7), [#allocation2], %s342_s25 }
  0x50   : > { %512 = dma.done.wait (%p786_p3), %s145_s23, 1024  }
  0x51   : > { %514 = vsyncadd (%p786_p3), %s145_s23, 4294966272  ;;  %p787_p11 = scmp.eq.s32.totalorder %s578_s13, 0 }
  0x53   : > { %516 = dma.done.wait (%p787_p11), [#allocation6], 128   ;;  %p788_p4 = pmov %p787_p11 }
  0x54   : > { %v183_v0 = vlaneseq  ;;  %v173_v10 = vld [vmem:[%s702_s28] sm:$0xff]  ;;  %v174_v12 = vld [vmem:[%s702_s28 + $0x8] sm:$0xff]  ;;  %v175_v15 = vld [vmem:[%s702_s28 + $0x10] sm:$0xff]  ;;  %s351_s15 = sshll.u32 %s578_s13, 10  ;;  %s172_s17 = scalar_lea.vmem [#allocation7], %s342_s25 }
  0x55   : > { %518 = vsyncadd (%p788_p4), [#allocation6], 4294967168  ;;  %v181_v11 = vld [vmem:[#allocation5] sm:$0xff]  ;;  %v176_v17 = vld [vmem:[%s702_s28 + $0x18] sm:$0xff]  ;;  %s254_s19 = sshll.u32 %s172_s17, 4  ;;  %s724_s26 = scalar_lea.hbm %s770_s2, %s351_s15  ;;  %s726_s19 = int_to_ptr.vmem [resolvable:$true] %s254_s19 }
  0x56   : > { %v184_v1 = vshrl.u32 %v183_v0, 7  ;;  %v177_v19 = vld [vmem:[%s702_s28 + $0x20] sm:$0xff]  ;;  %v178_v21 = vld [vmem:[%s702_s28 + $0x28] sm:$0xff]  ;;  %v179_v23 = vld [vmem:[%s702_s28 + $0x30] sm:$0xff]  ;;  %s240_s27 = scalar_lea.sflag [#allocation4], %s698_s22  ;;  %s467_s29 = scalar_lea.vmem %s726_s19, 1024 }
  0x57   : > { %v180_v25 = vld [vmem:[%s702_s28 + $0x38] sm:$0xff]  ;;  %p468_p6 = scmp.ne.s32.totalorder %s726_s19, %s467_s29  ;;  %s541_s30 = smov [#allocation7]  }
  0x58   : > { %v185_v2 = vsub.s32 0, %v184_v1  ;;  %v189_v3 = vsub.s32 1, %v184_v1  ;;  %v193_v4 = vsub.s32 2, %v184_v1  ;;  %v197_v5 = vsub.s32 3, %v184_v1  ;;  %s471_s3 = sshll.u32 %s541_s30, 4  ;;  %s472_s3 = int_to_ptr.vmem [resolvable:$false] %s471_s3 }
  0x59   : > { %v201_v6 = vsub.s32 4, %v184_v1  ;;  %v205_v7 = vsub.s32 5, %v184_v1  ;;  %v209_v8 = vsub.s32 6, %v184_v1  ;;  %v213_v9 = vsub.s32 7, %v184_v1  ;;  %p469_p9 = pnand %p468_p6, %p649_p8  ;;  %s473_s4 = scalar_lea.vmem %s472_s3, 2048 }
  0x5a   : > { %v186_v13 = vrot.slane %v181_v11, %v185_v2  ;;  %v190_v14 = vrot.slane %v181_v11, %v189_v3  ;;  %v194_v16 = vrot.slane %v181_v11, %v193_v4  ;;  %v198_v18 = vrot.slane %v181_v11, %v197_v5  ;;  %p474_p13 = scmp.lt.s32.totalorder %s726_s19, %s472_s3  ;;  %p475_p0 = scmp.lt.s32.totalorder %s473_s4, %s467_s29 }
  0x5b   : > { %v202_v20 = vrot.slane %v181_v11, %v201_v6  ;;  %v206_v22 = vrot.slane %v181_v11, %v205_v7  ;;  %v210_v24 = vrot.slane %v181_v11, %v209_v8  ;;  %v214_v26 = vrot.slane %v181_v11, %v213_v9  ;;  %p470_p12 = pneg %p469_p9 }
  0x5c   : > { %v223_v27 = vmul.f32 %v186_v13, %v173_v10  ;;  %v224_v28 = vmul.f32 %v190_v14, %v174_v12  ;;  %v225_v29 = vmul.f32 %v194_v16, %v175_v15  ;;  %v226_v30 = vmul.f32 %v198_v18, %v176_v17  ;;  %p476_p5 = por %p475_p0, %p474_p13 }
  0x5d   : > { %v227_v31 = vmul.f32 %v202_v20, %v177_v19  ;;  %v228_v32 = vmul.f32 %v206_v22, %v178_v21  ;;  %v229_v33 = vmul.f32 %v210_v24, %v179_v23  ;;  %v230_v34 = vmul.f32 %v214_v26, %v180_v25 }
  0x5e   : > { %231 = vst [vmem:[%s172_s17] sm:$0xff] %v223_v27  ;;  %232 = vst [vmem:[%s172_s17 + $0x8] sm:$0xff] %v224_v28  ;;  %p477_p10 = pnand %p476_p5, %p470_p12 }
  0x5f   : > { %233 = vst [vmem:[%s172_s17 + $0x10] sm:$0xff] %v225_v29  ;;  %234 = vst [vmem:[%s172_s17 + $0x18] sm:$0xff] %v226_v30 }
  0x60   : > { %235 = vst [vmem:[%s172_s17 + $0x20] sm:$0xff] %v227_v31  ;;  %236 = vst [vmem:[%s172_s17 + $0x28] sm:$0xff] %v228_v32 }
  0x61   : > { %237 = vst [vmem:[%s172_s17 + $0x30] sm:$0xff] %v229_v33  ;;  %238 = vst [vmem:[%s172_s17 + $0x38] sm:$0xff] %v230_v34 }
  0x62   : > { %480 = shalt.err (!%p477_p10)
}
  0x63   : > { %s481_s5 = scalar_lea.hbm %s724_s26, 1024  ;;  %s485_s18 = scalar_lea.hbm %s770_s2, 2048 }
  0x64   : > { %p482_p1 = scmp.ne.s32.totalorder %s724_s26, %s481_s5  ;;  %p486_p3 = scmp.lt.u32.totalorder %s724_s26, %s770_s2 }
  0x65   : > { %p487_p11 = scmp.lt.u32.totalorder %s485_s18, %s481_s5  ;;  %p489_p6 = scmp.lt.u32.totalorder %s481_s5, %s724_s26 }
  0x66   : > { %p483_p2 = pnand %p482_p1, %p649_p8 }
  0x67   : > { %p488_p4 = por %p487_p11, %p486_p3 }
  0x68   : > { %p484_p7 = pneg %p483_p2 }
  0x69   : > { %p490_p9 = por %p489_p6, %p488_p4 }
  0x6b   : > { %p491_p12 = pnand %p490_p9, %p484_p7 }
  0x6d   : > { %494 = shalt.err (!%p491_p12)
}
  0x6e   : > { %358 = dma.vmem_to_hbm [thread:$0]  (%p649_p8), %s726_s19, 1024, %s724_s26, %s240_s27  }
  0x6f PF: > { %s266_s25 = sand.u32 1, %s525_s9   ;;  %p789_p13 = scmp.ne.s32.totalorder %s775_s16, 0 }
  0x70   : > { %p790_p0 = scmp.ge.s32.totalorder %s537_s12, 2  ;;  %s267_s23 = scalar_lea.sflag [#allocation4], %s266_s25 }
  0x72   : > { %p369_p5 = pnand %p790_p0, %p789_p13 }
  0x74   : > { %520 = dma.done.wait (!%p369_p5), %s267_s23, 1024  }
  0x75   : > { %522 = vsyncadd (!%p369_p5), %s267_s23, 4294966272  ;;  %p16_p10 = scmp.ge.s32.totalorder %s605_s20, 4   ;;  %s791_s9 = smov %s529_s10 }
  0x76   : > { %s792_s10 = smov %s533_s11  ;;  %s793_s11 = smov %s641_s7 }
  0x77   : > { %s794_s12 = smov %s605_s20  ;;  %18 = sbr.rel (!%p16_p10) target bundleno = 6 (0x6), region = 77 }
  0x7e   :  { %272 = vsyncpa [#allocation3], 1 }
  0x7f   :  { %274 = vsyncpa [#allocation3 + $0x1], 1 }
  0x80   :  { %275 = vsyncpa [#allocation6], 1 }
  0x81   :  { %276 = vsyncpa [#allocation4], 1 }
  0x82   :  { %278 = vsyncpa [#allocation4 + $0x1], 1 }

</bundles_post_ra>
